<compile_context>
chip_gen: v7x
topology: tpu7x:2x2x1
jax: 0.10.0
libtpu: 0.0.40
codegen_flags: <defaults>
</compile_context>

<pallas_src>
import math
import functools

import jax
import jax.numpy as jnp
from jax import lax
from jax.experimental import pallas as pl
from jax.experimental.pallas import tpu as pltpu


def _mha_kernel(x_ref, wqkv_ref, wo_ref, bias_ref, o_ref, *,
                num_heads: int, batch: int, seq: int):
    # x_ref    : (S*B, E)  tokens, rows in natural (s, b) order (seq-major)
    # wqkv_ref : (3E, E)   in_proj_weight (untransposed, PyTorch layout)
    # wo_ref   : (E, E)    out_proj.weight (untransposed)
    # bias_ref : (1, 4E)   [in_proj_bias | out_proj.bias]
    # o_ref    : (S*B, E)  output rows in the same (s, b) order
    E = x_ref.shape[-1]
    H = num_heads
    hd = E // H
    SB = seq * batch
    scale = 1.0 / math.sqrt(hd)

    x = x_ref[...]                                        # (SB, E)
    bias = bias_ref[...]                                  # (1, 4E)
    bqkv = bias[:, 0:3 * E]                               # (1, 3E)
    bo = bias[:, 3 * E:4 * E]                             # (1, E)

    # --- QKV projection: one MXU matmul, contracting the weight's 2nd dim
    # (no transposed weight copies anywhere).
    qkv = lax.dot_general(x, wqkv_ref[...],
                          dimension_numbers=(((1,), (1,)), ((), ())),
                          preferred_element_type=jnp.float32) + bqkv    # (SB, 3E)

    # PyTorch scales q before the scores.
    q = qkv[:, 0 * E:1 * E] * scale                       # (SB, E)
    k = qkv[:, 1 * E:2 * E]
    v = qkv[:, 2 * E:3 * E]

    # --- All-head batched attention over the joint (s, b) token axis.
    # Head dim is the single leading batch axis of two batched einsums.
    qn = jnp.stack([q[:, h * hd:(h + 1) * hd] for h in range(H)], axis=0)  # (H, SB, hd)
    kn = jnp.stack([k[:, h * hd:(h + 1) * hd] for h in range(H)], axis=0)
    vn = jnp.stack([v[:, h * hd:(h + 1) * hd] for h in range(H)], axis=0)

    s = jnp.einsum('nqd,nkd->nqk', qn, kn,
                   preferred_element_type=jnp.float32)    # (H, SB, SB)

    # Same-batch mask: row r holds token (s = r // B, b = r % B), so tokens
    # attend only to rows with the same batch index.
    ri = lax.broadcasted_iota(jnp.int32, (SB, SB), 0)
    ci = lax.broadcasted_iota(jnp.int32, (SB, SB), 1)
    if batch & (batch - 1) == 0:                          # power-of-two fast path
        same_batch = (ri & (batch - 1)) == (ci & (batch - 1))
    else:
        same_batch = (ri % batch) == (ci % batch)
    s = jnp.where(same_batch[None, :, :], s, -1e30)

    # Softmax with an exact divide (nothing here is VALU/EUP bound).
    s = s - jnp.max(s, axis=-1, keepdims=True)
    p = jnp.exp(s)
    p = p / jnp.sum(p, axis=-1, keepdims=True)            # (H, SB, SB)

    on = jnp.einsum('nqk,nkd->nqd', p, vn,
                    preferred_element_type=jnp.float32)   # (H, SB, hd)

    # Re-pack heads onto the lane axis for the output projection.
    o = jnp.concatenate([on[h] for h in range(H)], axis=-1)   # (SB, E)

    # --- Output projection (untransposed weight) + bias.
    out = lax.dot_general(o, wo_ref[...],
                          dimension_numbers=(((1,), (1,)), ((), ())),
                          preferred_element_type=jnp.float32) + bo
    o_ref[...] = out.astype(o_ref.dtype)


@functools.partial(jax.jit, static_argnames=("num_heads",))
def time_attention(x_sbe, wqkv, bqkv, wo, bo, *, num_heads=8):
    """x_sbe: (S, B, E) float32, matching PyTorch nn.MultiheadAttention layout."""
    S, B, E = x_sbe.shape
    assert E % num_heads == 0

    # Only free reshapes + one tiny bias concat around the custom call.
    x2d = x_sbe.reshape(S * B, E)                          # contiguous collapse (bitcast)
    bias = jnp.concatenate([bqkv, bo]).reshape(1, 4 * E)   # single (1, 4E) operand

    kernel = functools.partial(_mha_kernel, num_heads=num_heads, batch=B, seq=S)

    # Grid-less call: the whole working set (a few KiB) is VMEM-resident.
    vmem = pl.BlockSpec(memory_space=pltpu.MemorySpace.VMEM)
    out2d = pl.pallas_call(
        kernel,
        out_shape=jax.ShapeDtypeStruct((S * B, E), x_sbe.dtype),
        in_specs=[vmem, vmem, vmem, vmem],
        out_specs=vmem,
    )(x2d, wqkv, wo, bias)

    return out2d.reshape(S, B, E)                          # free bitcast back to (S, B, E)


def _reference(x_sbe, wqkv, bqkv, wo, bo, num_heads=8):
    """Plain-JAX reference mirroring torch.nn.MultiheadAttention forward."""
    S, B, E = x_sbe.shape
    hd = E // num_heads
    qkv = jnp.einsum("sbe,fe->sbf", x_sbe, wqkv) + bqkv          # (S, B, 3E)
    q, k, v = jnp.split(qkv, 3, axis=-1)

    def heads(t):  # (S, B, E) -> (B, H, S, hd)
        return t.reshape(S, B, num_heads, hd).transpose(1, 2, 0, 3)

    qh, kh, vh = heads(q) / math.sqrt(hd), heads(k), heads(v)
    s = jnp.einsum("bhqd,bhkd->bhqk", qh, kh)
    p = jax.nn.softmax(s, axis=-1)
    o = jnp.einsum("bhqk,bhkd->bhqd", p, vh)                     # (B, H, S, hd)
    o = o.transpose(2, 0, 1, 3).reshape(S, B, E)
    return jnp.einsum("sbe,fe->sbf", o, wo) + bo


if __name__ == "__main__":
    S, B, E, H = 8, 2, 32, 8   # seq=8, batch=2, hidden=32, heads=8 (head_dim=4)

    key = jax.random.PRNGKey(0)
    kx, k1, k2, k3, k4 = jax.random.split(key, 5)

    x = jax.random.normal(kx, (S, B, E), dtype=jnp.float32)
    # Deterministic synthetic parameters (shapes from nn.MultiheadAttention(E, 8)).
    wqkv = jax.random.normal(k1, (3 * E, E), dtype=jnp.float32) * (1.0 / math.sqrt(E))
    bqkv = jax.random.normal(k2, (3 * E,), dtype=jnp.float32) * 0.02
    wo = jax.random.normal(k3, (E, E), dtype=jnp.float32) * (1.0 / math.sqrt(E))
    bo = jax.random.normal(k4, (E,), dtype=jnp.float32) * 0.02

    out = time_attention(x, wqkv, bqkv, wo, bo, num_heads=H)
    out = jax.block_until_ready(out)

    ref = _reference(x, wqkv, bqkv, wo, bo, num_heads=H)
    assert out.shape == (S, B, E)
    assert jnp.allclose(out, ref, atol=1e-4, rtol=1e-4), "mismatch vs reference"

    print("KERNEL_OK")
</pallas_src>

<mosaic_0001>
module attributes {stable_mosaic.version = 11 : i64} {
  func.func @_mha_kernel(%arg0: memref<16x32xf32, #tpu.memory_space<vmem>>, %arg1: memref<96x32xf32, #tpu.memory_space<vmem>>, %arg2: memref<32x32xf32, #tpu.memory_space<vmem>>, %arg3: memref<1x128xf32, #tpu.memory_space<vmem>>, %arg4: memref<16x32xf32, #tpu.memory_space<vmem>>) attributes {dimension_semantics = [], scalar_prefetch = 0 : i64, scratch_operands = 0 : i64, tpu.core_type = #tpu.core_type<tc>} {
    %c0 = arith.constant 0 : index
    %c0_0 = arith.constant 0 : index
    %0 = vector.load %arg0[%c0, %c0_0] : memref<16x32xf32, #tpu.memory_space<vmem>>, vector<16x32xf32>
    %c0_1 = arith.constant 0 : index
    %c0_2 = arith.constant 0 : index
    %1 = vector.load %arg3[%c0_1, %c0_2] : memref<1x128xf32, #tpu.memory_space<vmem>>, vector<1x128xf32>
    %2 = vector.extract_strided_slice %1 {offsets = [0, 0], sizes = [1, 96], strides = [1, 1]} : vector<1x128xf32> to vector<1x96xf32>
    %3 = vector.extract_strided_slice %1 {offsets = [0, 96], sizes = [1, 32], strides = [1, 1]} : vector<1x128xf32> to vector<1x32xf32>
    %c0_3 = arith.constant 0 : index
    %c0_4 = arith.constant 0 : index
    %4 = vector.load %arg1[%c0_3, %c0_4] : memref<96x32xf32, #tpu.memory_space<vmem>>, vector<96x32xf32>
    %cst = arith.constant dense<0.000000e+00> : vector<16x96xf32>
    %5 = tpu.matmul %0, %4, %cst {dimension_numbers = #tpu.dot_dimension_numbers<[1], [1], [0], [0], [0, 0, 1, 0], [], []>} : vector<16x32xf32>, vector<96x32xf32>, vector<16x96xf32> -> vector<16x96xf32>
    %6 = vector.broadcast %2 : vector<1x96xf32> to vector<16x96xf32>
    %7 = arith.addf %5, %6 : vector<16x96xf32>
    %8 = vector.extract_strided_slice %7 {offsets = [0, 0], sizes = [16, 32], strides = [1, 1]} : vector<16x96xf32> to vector<16x32xf32>
    %cst_5 = arith.constant 5.000000e-01 : f32
    %9 = vector.broadcast %cst_5 : f32 to vector<16x32xf32>
    %10 = arith.mulf %8, %9 : vector<16x32xf32>
    %11 = vector.extract_strided_slice %7 {offsets = [0, 32], sizes = [16, 32], strides = [1, 1]} : vector<16x96xf32> to vector<16x32xf32>
    %12 = vector.extract_strided_slice %7 {offsets = [0, 64], sizes = [16, 32], strides = [1, 1]} : vector<16x96xf32> to vector<16x32xf32>
    %13 = vector.extract_strided_slice %10 {offsets = [0, 0], sizes = [16, 4], strides = [1, 1]} : vector<16x32xf32> to vector<16x4xf32>
    %14 = vector.extract_strided_slice %10 {offsets = [0, 4], sizes = [16, 4], strides = [1, 1]} : vector<16x32xf32> to vector<16x4xf32>
    %15 = vector.extract_strided_slice %10 {offsets = [0, 8], sizes = [16, 4], strides = [1, 1]} : vector<16x32xf32> to vector<16x4xf32>
    %16 = vector.extract_strided_slice %10 {offsets = [0, 12], sizes = [16, 4], strides = [1, 1]} : vector<16x32xf32> to vector<16x4xf32>
    %17 = vector.extract_strided_slice %10 {offsets = [0, 16], sizes = [16, 4], strides = [1, 1]} : vector<16x32xf32> to vector<16x4xf32>
    %18 = vector.extract_strided_slice %10 {offsets = [0, 20], sizes = [16, 4], strides = [1, 1]} : vector<16x32xf32> to vector<16x4xf32>
    %19 = vector.extract_strided_slice %10 {offsets = [0, 24], sizes = [16, 4], strides = [1, 1]} : vector<16x32xf32> to vector<16x4xf32>
    %20 = vector.extract_strided_slice %10 {offsets = [0, 28], sizes = [16, 4], strides = [1, 1]} : vector<16x32xf32> to vector<16x4xf32>
    %21 = vector.shape_cast %13 : vector<16x4xf32> to vector<1x16x4xf32>
    %22 = vector.shape_cast %14 : vector<16x4xf32> to vector<1x16x4xf32>
    %23 = vector.shape_cast %15 : vector<16x4xf32> to vector<1x16x4xf32>
    %24 = vector.shape_cast %16 : vector<16x4xf32> to vector<1x16x4xf32>
    %25 = vector.shape_cast %17 : vector<16x4xf32> to vector<1x16x4xf32>
    %26 = vector.shape_cast %18 : vector<16x4xf32> to vector<1x16x4xf32>
    %27 = vector.shape_cast %19 : vector<16x4xf32> to vector<1x16x4xf32>
    %28 = vector.shape_cast %20 : vector<16x4xf32> to vector<1x16x4xf32>
    %29 = tpu.concatenate %21, %22, %23, %24, %25, %26, %27, %28 in 0 : vector<1x16x4xf32>, vector<1x16x4xf32>, vector<1x16x4xf32>, vector<1x16x4xf32>, vector<1x16x4xf32>, vector<1x16x4xf32>, vector<1x16x4xf32>, vector<1x16x4xf32> -> vector<8x16x4xf32>
    %30 = vector.extract_strided_slice %11 {offsets = [0, 0], sizes = [16, 4], strides = [1, 1]} : vector<16x32xf32> to vector<16x4xf32>
    %31 = vector.extract_strided_slice %11 {offsets = [0, 4], sizes = [16, 4], strides = [1, 1]} : vector<16x32xf32> to vector<16x4xf32>
    %32 = vector.extract_strided_slice %11 {offsets = [0, 8], sizes = [16, 4], strides = [1, 1]} : vector<16x32xf32> to vector<16x4xf32>
    %33 = vector.extract_strided_slice %11 {offsets = [0, 12], sizes = [16, 4], strides = [1, 1]} : vector<16x32xf32> to vector<16x4xf32>
    %34 = vector.extract_strided_slice %11 {offsets = [0, 16], sizes = [16, 4], strides = [1, 1]} : vector<16x32xf32> to vector<16x4xf32>
    %35 = vector.extract_strided_slice %11 {offsets = [0, 20], sizes = [16, 4], strides = [1, 1]} : vector<16x32xf32> to vector<16x4xf32>
    %36 = vector.extract_strided_slice %11 {offsets = [0, 24], sizes = [16, 4], strides = [1, 1]} : vector<16x32xf32> to vector<16x4xf32>
    %37 = vector.extract_strided_slice %11 {offsets = [0, 28], sizes = [16, 4], strides = [1, 1]} : vector<16x32xf32> to vector<16x4xf32>
    %38 = vector.shape_cast %30 : vector<16x4xf32> to vector<1x16x4xf32>
    %39 = vector.shape_cast %31 : vector<16x4xf32> to vector<1x16x4xf32>
    %40 = vector.shape_cast %32 : vector<16x4xf32> to vector<1x16x4xf32>
    %41 = vector.shape_cast %33 : vector<16x4xf32> to vector<1x16x4xf32>
    %42 = vector.shape_cast %34 : vector<16x4xf32> to vector<1x16x4xf32>
    %43 = vector.shape_cast %35 : vector<16x4xf32> to vector<1x16x4xf32>
    %44 = vector.shape_cast %36 : vector<16x4xf32> to vector<1x16x4xf32>
    %45 = vector.shape_cast %37 : vector<16x4xf32> to vector<1x16x4xf32>
    %46 = tpu.concatenate %38, %39, %40, %41, %42, %43, %44, %45 in 0 : vector<1x16x4xf32>, vector<1x16x4xf32>, vector<1x16x4xf32>, vector<1x16x4xf32>, vector<1x16x4xf32>, vector<1x16x4xf32>, vector<1x16x4xf32>, vector<1x16x4xf32> -> vector<8x16x4xf32>
    %47 = vector.extract_strided_slice %12 {offsets = [0, 0], sizes = [16, 4], strides = [1, 1]} : vector<16x32xf32> to vector<16x4xf32>
    %48 = vector.extract_strided_slice %12 {offsets = [0, 4], sizes = [16, 4], strides = [1, 1]} : vector<16x32xf32> to vector<16x4xf32>
    %49 = vector.extract_strided_slice %12 {offsets = [0, 8], sizes = [16, 4], strides = [1, 1]} : vector<16x32xf32> to vector<16x4xf32>
    %50 = vector.extract_strided_slice %12 {offsets = [0, 12], sizes = [16, 4], strides = [1, 1]} : vector<16x32xf32> to vector<16x4xf32>
    %51 = vector.extract_strided_slice %12 {offsets = [0, 16], sizes = [16, 4], strides = [1, 1]} : vector<16x32xf32> to vector<16x4xf32>
    %52 = vector.extract_strided_slice %12 {offsets = [0, 20], sizes = [16, 4], strides = [1, 1]} : vector<16x32xf32> to vector<16x4xf32>
    %53 = vector.extract_strided_slice %12 {offsets = [0, 24], sizes = [16, 4], strides = [1, 1]} : vector<16x32xf32> to vector<16x4xf32>
    %54 = vector.extract_strided_slice %12 {offsets = [0, 28], sizes = [16, 4], strides = [1, 1]} : vector<16x32xf32> to vector<16x4xf32>
    %55 = vector.shape_cast %47 : vector<16x4xf32> to vector<1x16x4xf32>
    %56 = vector.shape_cast %48 : vector<16x4xf32> to vector<1x16x4xf32>
    %57 = vector.shape_cast %49 : vector<16x4xf32> to vector<1x16x4xf32>
    %58 = vector.shape_cast %50 : vector<16x4xf32> to vector<1x16x4xf32>
    %59 = vector.shape_cast %51 : vector<16x4xf32> to vector<1x16x4xf32>
    %60 = vector.shape_cast %52 : vector<16x4xf32> to vector<1x16x4xf32>
    %61 = vector.shape_cast %53 : vector<16x4xf32> to vector<1x16x4xf32>
    %62 = vector.shape_cast %54 : vector<16x4xf32> to vector<1x16x4xf32>
    %63 = tpu.concatenate %55, %56, %57, %58, %59, %60, %61, %62 in 0 : vector<1x16x4xf32>, vector<1x16x4xf32>, vector<1x16x4xf32>, vector<1x16x4xf32>, vector<1x16x4xf32>, vector<1x16x4xf32>, vector<1x16x4xf32>, vector<1x16x4xf32> -> vector<8x16x4xf32>
    "tpu.trace_start"() <{level = 10 : i32, message = "nqd,nkd->nqk"}> : () -> ()
    %cst_6 = arith.constant dense<0.000000e+00> : vector<8x16x16xf32>
    %64 = tpu.matmul %29, %46, %cst_6 {dimension_numbers = #tpu.dot_dimension_numbers<[2], [2], [1], [1], [0, 0, 0, 1, 1, 1], [0], [0]>} : vector<8x16x4xf32>, vector<8x16x4xf32>, vector<8x16x16xf32> -> vector<8x16x16xf32>
    "tpu.trace_stop"() : () -> ()
    %65 = tpu.iota {dimensions = array<i32: 0>} : vector<16x16xi32>
    %66 = tpu.iota {dimensions = array<i32: 1>} : vector<16x16xi32>
    %c1_i32 = arith.constant 1 : i32
    %67 = vector.broadcast %c1_i32 : i32 to vector<16x16xi32>
    %68 = arith.andi %65, %67 : vector<16x16xi32>
    %c1_i32_7 = arith.constant 1 : i32
    %69 = vector.broadcast %c1_i32_7 : i32 to vector<16x16xi32>
    %70 = arith.andi %66, %69 : vector<16x16xi32>
    %71 = arith.cmpi eq, %68, %70 : vector<16x16xi32>
    %72 = vector.shape_cast %71 : vector<16x16xi1> to vector<1x16x16xi1>
    %cst_8 = arith.constant -1.000000e+30 : f32
    %73 = vector.shape_cast %72 : vector<1x16x16xi1> to vector<1x16x16xi1>
    %74 = vector.broadcast %73 : vector<1x16x16xi1> to vector<8x16x16xi1>
    %75 = vector.broadcast %cst_8 : f32 to vector<8x16x16xf32>
    %76 = arith.select %74, %64, %75 : vector<8x16x16xi1>, vector<8x16x16xf32>
    %cst_9 = arith.constant dense<0xFF800000> : vector<8x16xf32>
    %77 = vector.multi_reduction <maximumf>, %76, %cst_9 [2] : vector<8x16x16xf32> to vector<8x16xf32>
    %78 = vector.shape_cast %77 : vector<8x16xf32> to vector<8x16x1xf32>
    %79 = vector.broadcast %78 : vector<8x16x1xf32> to vector<8x16x16xf32>
    %80 = arith.subf %76, %79 : vector<8x16x16xf32>
    %81 = math.exp %80 : vector<8x16x16xf32>
    %cst_10 = arith.constant dense<0.000000e+00> : vector<8x16xf32>
    %82 = vector.multi_reduction <add>, %81, %cst_10 [2] : vector<8x16x16xf32> to vector<8x16xf32>
    %83 = vector.shape_cast %82 : vector<8x16xf32> to vector<8x16x1xf32>
    %84 = vector.broadcast %83 : vector<8x16x1xf32> to vector<8x16x16xf32>
    %85 = arith.divf %81, %84 : vector<8x16x16xf32>
    "tpu.trace_start"() <{level = 10 : i32, message = "nqk,nkd->nqd"}> : () -> ()
    %cst_11 = arith.constant dense<0.000000e+00> : vector<8x16x4xf32>
    %86 = tpu.matmul %85, %63, %cst_11 {dimension_numbers = #tpu.dot_dimension_numbers<[2], [1], [1], [2], [0, 0, 0, 1, 1, 2], [0], [0]>} : vector<8x16x16xf32>, vector<8x16x4xf32>, vector<8x16x4xf32> -> vector<8x16x4xf32>
    "tpu.trace_stop"() : () -> ()
    %87 = vector.extract_strided_slice %86 {offsets = [0, 0, 0], sizes = [1, 16, 4], strides = [1, 1, 1]} : vector<8x16x4xf32> to vector<1x16x4xf32>
    %88 = vector.shape_cast %87 : vector<1x16x4xf32> to vector<16x4xf32>
    %89 = vector.extract_strided_slice %86 {offsets = [1, 0, 0], sizes = [1, 16, 4], strides = [1, 1, 1]} : vector<8x16x4xf32> to vector<1x16x4xf32>
    %90 = vector.shape_cast %89 : vector<1x16x4xf32> to vector<16x4xf32>
    %91 = vector.extract_strided_slice %86 {offsets = [2, 0, 0], sizes = [1, 16, 4], strides = [1, 1, 1]} : vector<8x16x4xf32> to vector<1x16x4xf32>
    %92 = vector.shape_cast %91 : vector<1x16x4xf32> to vector<16x4xf32>
    %93 = vector.extract_strided_slice %86 {offsets = [3, 0, 0], sizes = [1, 16, 4], strides = [1, 1, 1]} : vector<8x16x4xf32> to vector<1x16x4xf32>
    %94 = vector.shape_cast %93 : vector<1x16x4xf32> to vector<16x4xf32>
    %95 = vector.extract_strided_slice %86 {offsets = [4, 0, 0], sizes = [1, 16, 4], strides = [1, 1, 1]} : vector<8x16x4xf32> to vector<1x16x4xf32>
    %96 = vector.shape_cast %95 : vector<1x16x4xf32> to vector<16x4xf32>
    %97 = vector.extract_strided_slice %86 {offsets = [5, 0, 0], sizes = [1, 16, 4], strides = [1, 1, 1]} : vector<8x16x4xf32> to vector<1x16x4xf32>
    %98 = vector.shape_cast %97 : vector<1x16x4xf32> to vector<16x4xf32>
    %99 = vector.extract_strided_slice %86 {offsets = [6, 0, 0], sizes = [1, 16, 4], strides = [1, 1, 1]} : vector<8x16x4xf32> to vector<1x16x4xf32>
    %100 = vector.shape_cast %99 : vector<1x16x4xf32> to vector<16x4xf32>
    %101 = vector.extract_strided_slice %86 {offsets = [7, 0, 0], sizes = [1, 16, 4], strides = [1, 1, 1]} : vector<8x16x4xf32> to vector<1x16x4xf32>
    %102 = vector.shape_cast %101 : vector<1x16x4xf32> to vector<16x4xf32>
    %103 = tpu.concatenate %88, %90, %92, %94, %96, %98, %100, %102 in 1 : vector<16x4xf32>, vector<16x4xf32>, vector<16x4xf32>, vector<16x4xf32>, vector<16x4xf32>, vector<16x4xf32>, vector<16x4xf32>, vector<16x4xf32> -> vector<16x32xf32>
    %c0_12 = arith.constant 0 : index
    %c0_13 = arith.constant 0 : index
    %104 = vector.load %arg2[%c0_12, %c0_13] : memref<32x32xf32, #tpu.memory_space<vmem>>, vector<32x32xf32>
    %cst_14 = arith.constant dense<0.000000e+00> : vector<16x32xf32>
    %105 = tpu.matmul %103, %104, %cst_14 {dimension_numbers = #tpu.dot_dimension_numbers<[1], [1], [0], [0], [0, 0, 1, 0], [], []>} : vector<16x32xf32>, vector<32x32xf32>, vector<16x32xf32> -> vector<16x32xf32>
    %106 = vector.broadcast %3 : vector<1x32xf32> to vector<16x32xf32>
    %107 = arith.addf %105, %106 : vector<16x32xf32>
    %c0_15 = arith.constant 0 : index
    %c0_16 = arith.constant 0 : index
    %108 = vector.load %arg4[%c0_15, %c0_16] : memref<16x32xf32, #tpu.memory_space<vmem>>, vector<16x32xf32>
    tpu.vector_store %arg4[%c0_15, %c0_16], %107 {strides = array<i32>} : memref<16x32xf32, #tpu.memory_space<vmem>>, vector<16x32xf32>,
    return
  }
}

</mosaic_0001>

<bundles_post_ra>
// kernel: time_attention.1
= control target key start
LH: loop header
LB: loop body
LE: loop exit
PB: predicated region body
PF: predicated region fallthrough
CT: control target
= control target key end

     0   :  { %vm39_vm0 = vcmask 261120   ;;  %s3153_s0 = inlined_call_operand.vmem [shape: f32[16,32], index: 0, kind: input, shape index: {}]   ;;  %s3154_s1 = inlined_call_operand.vmem [shape: f32[96,32], index: 1, kind: input, shape index: {}]   ;;  %s3155_s2 = inlined_call_operand.vmem [shape: f32[32,32], index: 2, kind: input, shape index: {}]   ;;  %s3156_s3 = inlined_call_operand.vmem [shape: f32[1,128], index: 3, kind: input, shape index: {}]   ;;  %s3157_s4 = inlined_call_operand.hbm [shape: f32[16,32], index: 4, kind: output, shape index: {}]  }
   0x1   :  { %v21_v0 = vld [vmem:[%s3154_s1] sm:$0xff]  ;;  %v22_v1 = vld [vmem:[%s3154_s1 + $0x8] sm:$0xff]  ;;  %v23_v2 = vld [vmem:[%s3154_s1 + $0x10] sm:$0xff] }
   0x2   :  { %v2315_v3 = vpack.c.bf16 %v22_v1, %v21_v0  ;;  %vm2721_vm1 = vmpackc.low %vm39_vm0, %vm39_vm0  ;;  %v24_v5 = vld [vmem:[%s3154_s1 + $0x18] sm:$0xff]  ;;  %v18_v7 = vld [vmem:[%s3153_s0] sm:$0xff] }
   0x3   :  { %v2321_v6 = vpack.c.bf16 %v24_v5, %v23_v2  ;;  %2189 = vmatprep.mubr.msk.f32.mxu0 %vm39_vm0, %v18_v7 }
   0x4   :  { %2317 = vmatprep.subr.msk.bf16.mxu0 %vm2721_vm1, %v2315_v3 }
   0x5   :  { %2320 = vmatpush3.bf16.xpose.msk.msra.mxu0 %vm2721_vm1, %v2315_v3 }
   0x6   :  { %2323 = vmatprep.subr.msk.bf16.mxu0 %vm2721_vm1, %v2321_v6 }
   0x7   :  { %9 = vsyncpa [#allocation3], 0  ;;  %v25_v8 = vld [vmem:[%s3154_s1 + $0x20] sm:$0xff]  ;;  %v26_v9 = vld [vmem:[%s3154_s1 + $0x28] sm:$0xff]  ;;  %vm223_vm2 = vcmask 31744   ;;  %s2667_s19 = smov 124  }
   0x8   :  { %v2327_v10 = vpack.c.bf16 %v26_v9, %v25_v8  ;;  %v27_v11 = vld [vmem:[%s3154_s1 + $0x30] sm:$0xff]  ;;  %v28_v12 = vld [vmem:[%s3154_s1 + $0x38] sm:$0xff]  ;;  %v29_v14 = vld [vmem:[%s3154_s1 + $0x40] sm:$0xff]  ;;  %s2669_s20 = smov 120   ;;  %s2670_s21 = smov 104   ;;  %vm946_vm6 = vcmask 130048  }
   0x9   :  { %v2333_v13 = vpack.c.bf16 %v28_v12, %v27_v11  ;;  %v30_v15 = vld [vmem:[%s3154_s1 + $0x48] sm:$0xff]  ;;  %v31_v17 = vld [vmem:[%s3154_s1 + $0x50] sm:$0xff]  ;;  %v32_v18 = vld [vmem:[%s3154_s1 + $0x58] sm:$0xff]  ;;  %s2666_s1 = smov 116   ;;  %s2671_s22 = smov 108   ;;  %vm1877_vm7 = vcmask 64512  }
   0xa   :  { %v2339_v16 = vpack.c.bf16 %v30_v15, %v29_v14  ;;  %v2345_v19 = vpack.c.bf16 %v32_v18, %v31_v17  ;;  %v19_v20 = vld [vmem:[%s3153_s0 + $0x8] sm:$0xff]  ;;  %v2012_v21 = vld [vmem:[%s3156_s3] ss:$0 sm:$0xff]  ;;  %s2668_s0 = smov 112   ;;  %s2672_s23 = smov 96   ;;  %vm2810_vm3 = vmpackc.low %vm223_vm2, %vm223_vm2  ;;  %vm1880_vm8 = vcmask 97280  }
   0xb   :  { %s2673_s24 = smov 100   ;;  %s2674_s25 = smov 64   ;;  %vm1885_vm9 = vcmask 162816   ;;  %vm1888_vm10 = vcmask 195584   ;;  %vm1891_vm11 = vcmask 228352  }
   0xc   :  { %s2675_s26 = smov 4   ;;  %s2676_s27 = smov 8  }
   0xd   :  { %2326 = vmatpush3.bf16.xpose.msk.msra.mxu0 %vm2721_vm1, %v2321_v6  ;;  %s2677_s28 = smov 12   ;;  %s2678_s11 = smov 16  }
   0xe   :  { %2329 = vmatprep.subr.msk.bf16.mxu0 %vm2721_vm1, %v2327_v10  ;;  %s2679_s12 = smov 20   ;;  %s2681_s13 = smov 28  }
   0xf   :  { %s2682_s16 = smov 32  }
  0x15   :  { %2332 = vmatpush3.bf16.xpose.msk.msra.mxu0 %vm2721_vm1, %v2327_v10 }
  0x16   :  { %2335 = vmatprep.subr.msk.bf16.mxu0 %vm2721_vm1, %v2333_v13 }
  0x1d   :  { %2338 = vmatpush3.bf16.xpose.msk.msra.mxu0 %vm2721_vm1, %v2333_v13 }
  0x1e   :  { %2341 = vmatprep.subr.msk.bf16.mxu0 %vm2721_vm1, %v2339_v16 }
  0x25   :  { %2344 = vmatpush3.bf16.xpose.msk.msra.mxu0 %vm2721_vm1, %v2339_v16 }
  0x26   :  { %2347 = vmatprep.subr.msk.bf16.mxu0 %vm2721_vm1, %v2345_v19 }
  0x2d   :  { %2350 = vmatpush3.bf16.xpose.msk.msra.mxu0 %vm2721_vm1, %v2345_v19 }
  0x34   :  { %2190 = vmatmul.mubr.msk.f32.vlgmr.msra.gmra.mrb[0].mxu0 %vm39_vm0, %v19_v20 }
 0x107   :  { %v2191_v22 = vpop.f32.mrb[0].mxu0 }
 0x108   :  { %v154_v23 = vadd.f32 %v2191_v22, %v2012_v21  ;;  %v148_v24 = vpop.f32.mrb[1].mxu0 }
 0x109   :  { %v149_v25 = vadd.f32 %v2012_v21, %v148_v24 }
 0x10a   :  { %v158_v34 = vmul.f32 0.5, %v154_v23 }
 0x10b   :  { %v2472_v26 = vpack.i.bf16 %v154_v23, %v149_v25  ;;  %v157_v27 = vmul.f32 0.5, %v149_v25 }
 0x10d   :  { %2473 = vrot.lane.b32.xlu1 %v2472_v26, %s2666_s1  ;;  %2463 = vrot.lane.b32.xlu0 %v2472_v26, %s2667_s19 }
 0x10e   :  { %2196 = vmatprep.mubr.msk.f32.mxu1 %vm223_vm2, %v157_v27 }
 0x111   :  { %2478 = vrot.lane.b32.xlu1 %v2472_v26, %s2668_s0  ;;  %2468 = vrot.lane.b32.xlu0 %v2472_v26, %s2669_s20 }
 0x115   :  { %2488 = vrot.lane.b32.xlu1 %v2472_v26, %s2670_s21  ;;  %2483 = vrot.lane.b32.xlu0 %v2472_v26, %s2671_s22 }
 0x119   :  { %2498 = vrot.lane.b32.xlu1 %v2472_v26, %s2672_s23  ;;  %2493 = vrot.lane.b32.xlu0 %v2472_v26, %s2673_s24 }
 0x17f   :  { %v2794_v28 = vpop.permute.xlu1 %2473  ;;  %v2464_v29 = vpop.permute.xlu0 %2463 }
 0x180   :  { %2503 = vrot.lane.b32.xlu0 %v2464_v29, %s2672_s23 }
 0x183   :  { %v2796_v30 = vpop.permute.xlu1 %2478  ;;  %v2469_v31 = vpop.permute.xlu0 %2468 }
 0x184   :  { %2508 = vrot.lane.b32.xlu1 %v2469_v31, %s2672_s23  ;;  %161 = vrot.lane.b32.xlu0 %v157_v27, %s2667_s19 }
 0x187   :  { %v2799_v32 = vpop.permute.xlu1 %2488  ;;  %v2801_v33 = vpop.permute.xlu0 %2483 }
 0x188   :  { %163 = vrot.lane.b32.xlu1 %v158_v34, %s2667_s19  ;;  %2513 = vrot.lane.b32.xlu0 %v2794_v28, %s2672_s23 }
 0x18b   :  { %v2499_v35 = vpop.permute.xlu1 %2498  ;;  %v2804_v36 = vpop.permute.xlu0 %2493 }
 0x18c   :  { %v2501_v37 = vunpack.i.h.bf16 %v2499_v35  ;;  %v2500_v38 = vunpack.i.l.bf16 %v2499_v35  ;;  %165 = vrot.lane.b32.xlu1 %v157_v27, %s2669_s20  ;;  %167 = vrot.lane.b32.xlu0 %v158_v34, %s2669_s20 }
 0x18e   :  { %v2351_v40 = vpack.c.bf16 %v2501_v37, %v2500_v38  ;;  %v916_v37 = vlaneseq }
 0x190   :  { %2353 = vmatprep.subr.msk.bf16.mxu1 %vm2810_vm3, %v2351_v40  ;;  %2518 = vrot.lane.b32.xlu1 %v2796_v30, %s2672_s23  ;;  %v917_v38 = vshrl.u32 %v916_v37, 7 }
 0x191   :  { %2356 = vmatpush3.bf16.xpose.msk.msra.mxu1 %vm2810_vm3, %v2351_v40  ;;  %169 = vrot.lane.b32.xlu0 %v157_v27, %s2666_s1 }
 0x192   :  { %v918_v40 = vadd.s32 8, %v917_v38 }
 0x194   :  { %171 = vrot.lane.b32.xlu1 %v158_v34, %s2666_s1 }
 0x195   :  { %2523 = vrot.lane.b32.xlu0 %v2801_v33, %s2672_s23 }
 0x198   :  { %2197 = vmatmul.mubr.msk.f32.vlgmr.msra.gmra.mrb[0].mxu1 %vm223_vm2, %v158_v34  ;;  %173 = vrot.lane.b32.xlu1 %v157_v27, %s2668_s0 }
 0x199   :  { %175 = vrot.lane.b32.xlu0 %v158_v34, %s2668_s0 }
 0x19c   :  { %2528 = vrot.lane.b32.xlu1 %v2799_v32, %s2672_s23 }
 0x19d   :  { %177 = vrot.lane.b32.xlu0 %v157_v27, %s2671_s22 }
 0x1a0   :  { %179 = vrot.lane.b32.xlu1 %v158_v34, %s2671_s22 }
 0x1a1   :  { %2533 = vrot.lane.b32.xlu0 %v2804_v36, %s2672_s23 }
 0x1a4   :  { %181 = vrot.lane.b32.xlu1 %v157_v27, %s2670_s21 }
 0x1a5   :  { %183 = vrot.lane.b32.xlu0 %v158_v34, %s2670_s21 }
 0x1a8   :  { %185 = vrot.lane.b32.xlu1 %v157_v27, %s2673_s24 }
 0x1a9   :  { %187 = vrot.lane.b32.xlu0 %v158_v34, %s2673_s24 }
 0x1ac   :  { %2543 = vrot.lane.b32.xlu1 %v2464_v29, %s2674_s25 }
 0x1ad   :  { %2538 = vrot.lane.b32.xlu0 %v2472_v26, %s2674_s25 }
 0x1b0   :  { %2548 = vrot.lane.b32.xlu1 %v2469_v31, %s2674_s25 }
 0x1f2   :  { %v2504_v41 = vpop.permute.xlu0 %2503 }
 0x1f3   :  { %v2506_v42 = vunpack.i.h.bf16 %v2504_v41  ;;  %v2505_v43 = vunpack.i.l.bf16 %v2504_v41  ;;  %v920_v41 = vand.u32 127, %v916_v37 }
 0x1f5   :  { %v2357_v44 = vpack.c.bf16 %v2506_v42, %v2505_v43  ;;  %v922_v42 = vand.u32 1, %v918_v40  ;;  %v923_v43 = vand.u32 1, %v920_v41 }
 0x1f6   :  { %v2509_v45 = vpop.permute.xlu1 %2508  ;;  %v162_v46 = vpop.permute.xlu0 %161 }
 0x1f7   :  { %v2511_v47 = vunpack.i.h.bf16 %v2509_v45  ;;  %v2510_v48 = vunpack.i.l.bf16 %v2509_v45  ;;  %2359 = vmatprep.subr.msk.bf16.mxu1 %vm2810_vm3, %v2357_v44  ;;  %2203 = vmatprep.mubr.msk.f32.mxu1 %vm223_vm2, %v162_v46  ;;  %vm2885_vm4 = vcmp.eq.s32.totalorder %v922_v42, %v923_v43 }
 0x1f8   :  { %2362 = vmatpush3.bf16.xpose.msk.msra.mxu1 %vm2810_vm3, %v2357_v44  ;;  %v921_v44 = vand.u32 1, %v917_v38 }
 0x1f9   :  { %v2363_v49 = vpack.c.bf16 %v2511_v47, %v2510_v48 }
 0x1fa   :  { %v164_v50 = vpop.permute.xlu1 %163  ;;  %v2514_v51 = vpop.permute.xlu0 %2513  ;;  %vm2889_vm5 = vcmp.eq.s32.totalorder %v921_v44, %v923_v43 }
 0x1fb   :  { %v2516_v52 = vunpack.i.h.bf16 %v2514_v51  ;;  %v2515_v53 = vunpack.i.l.bf16 %v2514_v51  ;;  %2365 = vmatprep.subr.msk.bf16.mxu1 %vm2810_vm3, %v2363_v49 }
 0x1fd   :  { %v2369_v55 = vpack.c.bf16 %v2516_v52, %v2515_v53 }
 0x1fe   :  { %v166_v54 = vpop.permute.xlu1 %165  ;;  %v168_v56 = vpop.permute.xlu0 %167 }
 0x1ff   :  { %2204 = vmatmul.mubr.msk.f32.vlgmr.msra.gmra.mrb[2].mxu1 %vm223_vm2, %v164_v50 }
 0x200   :  { %2368 = vmatpush3.bf16.xpose.msk.msra.mxu1 %vm2810_vm3, %v2363_v49  ;;  %2210 = vmatprep.mubr.msk.f32.mxu1 %vm223_vm2, %v166_v54 }
 0x201   :  { %2371 = vmatprep.subr.msk.bf16.mxu1 %vm2810_vm3, %v2369_v55 }
 0x202   :  { %v2519_v57 = vpop.permute.xlu1 %2518 }
 0x203   :  { %v2521_v58 = vunpack.i.h.bf16 %v2519_v57  ;;  %v2520_v59 = vunpack.i.l.bf16 %v2519_v57  ;;  %v170_v60 = vpop.permute.xlu0 %169 }
 0x205   :  { %v2375_v62 = vpack.c.bf16 %v2521_v58, %v2520_v59 }
 0x206   :  { %v172_v61 = vpop.permute.xlu1 %171 }
 0x207   :  { %v2524_v63 = vpop.permute.xlu0 %2523  ;;  %2211 = vmatmul.mubr.msk.f32.vlgmr.msra.gmra.mrb[4].mxu1 %vm223_vm2, %v168_v56 }
 0x208   :  { %2374 = vmatpush3.bf16.xpose.msk.msra.mxu1 %vm2810_vm3, %v2369_v55  ;;  %2217 = vmatprep.mubr.msk.f32.mxu1 %vm223_vm2, %v170_v60  ;;  %v2526_v1 = vunpack.i.h.bf16 %v2524_v63  ;;  %v2525_v2 = vunpack.i.l.bf16 %v2524_v63 }
 0x209   :  { %2377 = vmatprep.subr.msk.bf16.mxu1 %vm2810_vm3, %v2375_v62 }
 0x20a   :  { %v174_v0 = vpop.permute.xlu1 %173  ;;  %v2381_v6 = vpack.c.bf16 %v2526_v1, %v2525_v2 }
 0x20b   :  { %v176_v3 = vpop.permute.xlu0 %175 }
 0x20e   :  { %v2529_v5 = vpop.permute.xlu1 %2528 }
 0x20f   :  { %v178_v7 = vpop.permute.xlu0 %177  ;;  %2218 = vmatmul.mubr.msk.f32.vlgmr.msra.gmra.mrb[6].mxu1 %vm223_vm2, %v172_v61  ;;  %v2531_v9 = vunpack.i.h.bf16 %v2529_v5  ;;  %v2530_v10 = vunpack.i.l.bf16 %v2529_v5 }
 0x210   :  { %2380 = vmatpush3.bf16.xpose.msk.msra.mxu1 %vm2810_vm3, %v2375_v62  ;;  %2224 = vmatprep.mubr.msk.f32.mxu1 %vm223_vm2, %v174_v0 }
 0x211   :  { %2383 = vmatprep.subr.msk.bf16.mxu1 %vm2810_vm3, %v2381_v6  ;;  %v2387_v13 = vpack.c.bf16 %v2531_v9, %v2530_v10 }
 0x212   :  { %v180_v8 = vpop.permute.xlu1 %179 }
 0x213   :  { %v2534_v11 = vpop.permute.xlu0 %2533 }
 0x214   :  { %v2536_v16 = vunpack.i.h.bf16 %v2534_v11  ;;  %v2535_v17 = vunpack.i.l.bf16 %v2534_v11 }
 0x216   :  { %v182_v12 = vpop.permute.xlu1 %181  ;;  %v2393_v20 = vpack.c.bf16 %v2536_v16, %v2535_v17 }
 0x217   :  { %v184_v14 = vpop.permute.xlu0 %183  ;;  %2225 = vmatmul.mubr.msk.f32.vlgmr.msra.gmra.mrb[8].mxu1 %vm223_vm2, %v176_v3 }
 0x218   :  { %2386 = vmatpush3.bf16.xpose.msk.msra.mxu1 %vm2810_vm3, %v2381_v6  ;;  %2231 = vmatprep.mubr.msk.f32.mxu1 %vm223_vm2, %v178_v7 }
 0x219   :  { %2389 = vmatprep.subr.msk.bf16.mxu1 %vm2810_vm3, %v2387_v13 }
 0x21a   :  { %v186_v15 = vpop.permute.xlu1 %185 }
 0x21b   :  { %v188_v18 = vpop.permute.xlu0 %187 }
 0x21e   :  { %v2544_v19 = vpop.permute.xlu1 %2543 }
 0x21f   :  { %v2539_v21 = vpop.permute.xlu0 %2538  ;;  %2232 = vmatmul.mubr.msk.f32.vlgmr.msra.gmra.mrb[10].mxu1 %vm223_vm2, %v180_v8  ;;  %v2546_v26 = vunpack.i.h.bf16 %v2544_v19  ;;  %v2545_v27 = vunpack.i.l.bf16 %v2544_v19 }
 0x220   :  { %v2541_v22 = vunpack.i.h.bf16 %v2539_v21  ;;  %v2540_v23 = vunpack.i.l.bf16 %v2539_v21  ;;  %2392 = vmatpush3.bf16.xpose.msk.msra.mxu1 %vm2810_vm3, %v2387_v13  ;;  %2238 = vmatprep.mubr.msk.f32.mxu1 %vm223_vm2, %v182_v12 }
 0x221   :  { %2395 = vmatprep.subr.msk.bf16.mxu1 %vm2810_vm3, %v2393_v20  ;;  %v2403_v35 = vpack.c.bf16 %v2546_v26, %v2545_v27 }
 0x222   :  { %v2399_v24 = vpack.c.bf16 %v2541_v22, %v2540_v23  ;;  %v2549_v25 = vpop.permute.xlu1 %2548 }
 0x223   :  { %v2551_v29 = vunpack.i.h.bf16 %v2549_v25  ;;  %v2550_v31 = vunpack.i.l.bf16 %v2549_v25 }
 0x224   :  { %2400 = vmatprep.subr.bf16.mxu0 %v2399_v24 }
 0x225   :  { %v2877_v34 = vpack.c.bf16 %v2551_v29, %v2550_v31  ;;  %2402 = vmatpush3.bf16.msra.mxu0 %v2399_v24 }
 0x227   :  { %2239 = vmatmul.mubr.msk.f32.vlgmr.msra.gmra.mrb[12].mxu1 %vm223_vm2, %v184_v14  ;;  %2408 = vmatprep.subr.bf16.mxu0 %v2877_v34 }
 0x228   :  { %2398 = vmatpush3.bf16.xpose.msk.msra.mxu1 %vm2810_vm3, %v2393_v20  ;;  %2245 = vmatprep.mubr.msk.f32.mxu1 %vm223_vm2, %v186_v15 }
 0x229   :  { %2404 = vmatprep.subr.bf16.mxu1 %v2403_v35 }
 0x22f   :  { %2246 = vmatmul.mubr.msk.f32.vlgmr.msra.gmra.mrb[14].mxu1 %vm223_vm2, %v188_v18 }
 0x230   :  { %2406 = vmatpush3.bf16.msra.mxu1 %v2403_v35 }
 0x26b   :  { %v2198_v46 = vpop.f32.mrb[0].mxu1 }
 0x26c   :  { %v931_v47 = vsel %vm2885_vm4, %v2198_v46, -1e+30  ;;  %v298_v48 = vpop.f32.mrb[1].mxu1 }
 0x26d   :  { %v930_v49 = vsel %vm2889_vm5, %v298_v48, -1e+30  ;;  %v950_v50 = vsel %vm946_vm6, %v931_v47, -inf }
 0x26e   :  { %951 = vmax.xlane.f32.xlu0 %v950_v50  ;;  %v947_v51 = vsel %vm946_vm6, %v930_v49, -inf }
 0x26f   :  { %948 = vmax.xlane.f32.xlu1 %v947_v51 }
 0x2d2   :  { %v2205_v52 = vpop.f32.mrb[2].mxu1 }
 0x2d3   :  { %v2901_v53 = vsel %vm2885_vm4, %v2205_v52, -1e+30  ;;  %v385_v54 = vpop.f32.mrb[3].mxu1 }
 0x2d4   :  { %v2905_v55 = vsel %vm2889_vm5, %v385_v54, -1e+30  ;;  %v956_v56 = vsel %vm946_vm6, %v2901_v53, -inf }
 0x2d5   :  { %957 = vmax.xlane.f32.xlu1 %v956_v56  ;;  %v953_v57 = vsel %vm946_vm6, %v2905_v55, -inf }
 0x2d6   :  { %954 = vmax.xlane.f32.xlu0 %v953_v57 }
 0x2da   :  { %v2212_v58 = vpop.f32.mrb[4].mxu1 }
 0x2db   :  { %v2913_v59 = vsel %vm2885_vm4, %v2212_v58, -1e+30  ;;  %v472_v60 = vpop.f32.mrb[5].mxu1 }
 0x2dc   :  { %v2917_v61 = vsel %vm2889_vm5, %v472_v60, -1e+30  ;;  %v962_v62 = vsel %vm946_vm6, %v2913_v59, -inf }
 0x2dd   :  { %963 = vmax.xlane.f32.xlu1 %v962_v62  ;;  %v959_v63 = vsel %vm946_vm6, %v2917_v61, -inf }
 0x2de   :  { %960 = vmax.xlane.f32.xlu0 %v959_v63 }
 0x2e2   :  { %v2219_v0 = vpop.f32.mrb[6].mxu1 }
 0x2e3   :  { %v2925_v1 = vsel %vm2885_vm4, %v2219_v0, -1e+30  ;;  %v559_v2 = vpop.f32.mrb[7].mxu1 }
 0x2e4   :  { %v2929_v3 = vsel %vm2889_vm5, %v559_v2, -1e+30  ;;  %v968_v5 = vsel %vm946_vm6, %v2925_v1, -inf }
 0x2e5   :  { %969 = vmax.xlane.f32.xlu1 %v968_v5  ;;  %v965_v6 = vsel %vm946_vm6, %v2929_v3, -inf }
 0x2e6   :  { %966 = vmax.xlane.f32.xlu0 %v965_v6 }
 0x2ea   :  { %v2226_v7 = vpop.f32.mrb[8].mxu1 }
 0x2eb   :  { %v2937_v8 = vsel %vm2885_vm4, %v2226_v7, -1e+30  ;;  %v646_v9 = vpop.f32.mrb[9].mxu1 }
 0x2ec   :  { %v2941_v10 = vsel %vm2889_vm5, %v646_v9, -1e+30  ;;  %v974_v11 = vsel %vm946_vm6, %v2937_v8, -inf }
 0x2ed   :  { %975 = vmax.xlane.f32.xlu1 %v974_v11  ;;  %v971_v12 = vsel %vm946_vm6, %v2941_v10, -inf }
 0x2ee   :  { %972 = vmax.xlane.f32.xlu0 %v971_v12 }
 0x2f2   :  { %v2233_v13 = vpop.f32.mrb[10].mxu1 }
 0x2f3   :  { %v2949_v14 = vsel %vm2885_vm4, %v2233_v13, -1e+30  ;;  %v733_v15 = vpop.f32.mrb[11].mxu1 }
 0x2f4   :  { %v2953_v16 = vsel %vm2889_vm5, %v733_v15, -1e+30  ;;  %v980_v17 = vsel %vm946_vm6, %v2949_v14, -inf }
 0x2f5   :  { %981 = vmax.xlane.f32.xlu1 %v980_v17  ;;  %v977_v18 = vsel %vm946_vm6, %v2953_v16, -inf }
 0x2f6   :  { %978 = vmax.xlane.f32.xlu0 %v977_v18 }
 0x2fa   :  { %v2240_v24 = vpop.f32.mrb[12].mxu1 }
 0x2fb   :  { %v952_v19 = vpop.xlane.xlu0 %951  ;;  %v2961_v26 = vsel %vm2885_vm4, %v2240_v24, -1e+30  ;;  %v820_v27 = vpop.f32.mrb[13].mxu1 }
 0x2fc   :  { %v996_v20 = vsub.f32 %v931_v47, %v952_v19  ;;  %v949_v21 = vpop.xlane.xlu1 %948  ;;  %v2965_v29 = vsel %vm2889_vm5, %v820_v27, -1e+30  ;;  %v986_v31 = vsel %vm946_vm6, %v2961_v26, -inf }
 0x2fd   :  { %v995_v22 = vsub.f32 %v930_v49, %v949_v21  ;;  %987 = vmax.xlane.f32.xlu1 %v986_v31  ;;  %v983_v35 = vsel %vm946_vm6, %v2965_v29, -inf }
 0x2fe   :  { %v1013_v23 = vmul.f32 1.442695, %v996_v20  ;;  %984 = vmax.xlane.f32.xlu0 %v983_v35 }
 0x2ff   :  { %v1011_v25 = vmul.f32 1.442695, %v995_v22 }
 0x300   :  { %2577 = vpow2.f32 %v1013_v23 }
 0x301   :  { %2579 = vpow2.f32 %v1011_v25 }
 0x302   :  { %v2247_v37 = vpop.f32.mrb[14].mxu1 }
 0x303   :  { %v907_v38 = vpop.f32.mrb[15].mxu1  ;;  %v2979_v43 = vsel %vm2885_vm4, %v2247_v37, -1e+30 }
 0x304   :  { %v2985_v46 = vsel %vm2889_vm5, %v907_v38, -1e+30  ;;  %v992_v47 = vsel %vm946_vm6, %v2979_v43, -inf }
 0x305   :  { %v989_v48 = vsel %vm946_vm6, %v2985_v46, -inf }
 0x30a   :  { %v2971_v40 = vpop.eup %2577 }
 0x30b   :  { %v2973_v41 = vpop.eup %2579  ;;  %v1046_v42 = vsel %vm946_vm6, %v2971_v40, 0.0 }
 0x30c   :  { %1047 = vadd.xlane.f32.xlu1 %v1046_v42  ;;  %v1043_v44 = vsel %vm946_vm6, %v2973_v41, 0.0 }
 0x30d   :  { %1044 = vadd.xlane.f32.xlu0 %v1043_v44 }
 0x310   :  { %993 = vmax.xlane.f32.xlu1 %v992_v47 }
 0x311   :  { %990 = vmax.xlane.f32.xlu0 %v989_v48 }
 0x321   :  { %2558 = vrot.lane.b32.xlu1 %v2796_v30, %s2674_s25 }
 0x327   :  { %2553 = vrot.lane.b32.xlu0 %v2794_v28, %s2674_s25 }
 0x32b   :  { %2563 = vrot.lane.b32.xlu0 %v2801_v33, %s2674_s25 }
 0x362   :  { %v958_v45 = vpop.xlane.xlu1 %957 }
 0x363   :  { %v998_v39 = vsub.f32 %v2901_v53, %v958_v45  ;;  %v955_v49 = vpop.xlane.xlu0 %954 }
 0x364   :  { %v997_v50 = vsub.f32 %v2905_v55, %v955_v49 }
 0x365   :  { %v1017_v51 = vmul.f32 1.442695, %v998_v39 }
 0x366   :  { %v1015_v52 = vmul.f32 1.442695, %v997_v50 }
 0x367   :  { %2581 = vpow2.f32 %v1017_v51 }
 0x368   :  { %2583 = vpow2.f32 %v1015_v52 }
 0x36a   :  { %v964_v54 = vpop.xlane.xlu1 %963 }
 0x36b   :  { %v1000_v56 = vsub.f32 %v2913_v59, %v964_v54  ;;  %v961_v30 = vpop.xlane.xlu0 %960 }
 0x36c   :  { %v999_v57 = vsub.f32 %v2917_v61, %v961_v30 }
 0x36d   :  { %v1021_v28 = vmul.f32 1.442695, %v1000_v56 }
 0x36e   :  { %v1019_v58 = vmul.f32 1.442695, %v999_v57 }
 0x36f   :  { %2585 = vpow2.f32 %v1021_v28 }
 0x370   :  { %2587 = vpow2.f32 %v1019_v58 }
 0x371   :  { %v3001_v33 = vpop.eup %2581 }
 0x372   :  { %v3003_v53 = vpop.eup %2583  ;;  %v970_v60 = vpop.xlane.xlu1 %969  ;;  %v1052_v55 = vsel %vm946_vm6, %v3001_v33, 0.0 }
 0x373   :  { %v1002_v62 = vsub.f32 %v2925_v1, %v970_v60  ;;  %v967_v63 = vpop.xlane.xlu0 %966  ;;  %1053 = vadd.xlane.f32.xlu1 %v1052_v55  ;;  %v1049_v59 = vsel %vm946_vm6, %v3003_v53, 0.0 }
 0x374   :  { %v1001_v61 = vsub.f32 %v2929_v3, %v967_v63  ;;  %1050 = vadd.xlane.f32.xlu0 %v1049_v59 }
 0x375   :  { %v1025_v0 = vmul.f32 1.442695, %v1002_v62 }
 0x376   :  { %v1023_v2 = vmul.f32 1.442695, %v1001_v61 }
 0x377   :  { %2589 = vpow2.f32 %v1025_v0 }
 0x378   :  { %2591 = vpow2.f32 %v1023_v2 }
 0x379   :  { %v3011_v5 = vpop.eup %2585 }
 0x37a   :  { %v3013_v6 = vpop.eup %2587  ;;  %v976_v7 = vpop.xlane.xlu1 %975  ;;  %v1058_v1 = vsel %vm946_vm6, %v3011_v5, 0.0 }
 0x37b   :  { %v1004_v9 = vsub.f32 %v2937_v8, %v976_v7  ;;  %v973_v11 = vpop.xlane.xlu0 %972  ;;  %1059 = vadd.xlane.f32.xlu1 %v1058_v1  ;;  %v1055_v3 = vsel %vm946_vm6, %v3013_v6, 0.0 }
 0x37c   :  { %v1003_v12 = vsub.f32 %v2941_v10, %v973_v11  ;;  %1056 = vadd.xlane.f32.xlu0 %v1055_v3 }
 0x37d   :  { %v1029_v13 = vmul.f32 1.442695, %v1004_v9 }
 0x37e   :  { %v1027_v15 = vmul.f32 1.442695, %v1003_v12 }
 0x37f   :  { %2593 = vpow2.f32 %v1029_v13 }
 0x380   :  { %2595 = vpow2.f32 %v1027_v15 }
 0x381   :  { %v3021_v17 = vpop.eup %2589 }
 0x382   :  { %v3023_v18 = vpop.eup %2591  ;;  %v982_v19 = vpop.xlane.xlu1 %981  ;;  %v1064_v8 = vsel %vm946_vm6, %v3021_v17, 0.0 }
 0x383   :  { %v1006_v20 = vsub.f32 %v2949_v14, %v982_v19  ;;  %v979_v21 = vpop.xlane.xlu0 %978  ;;  %1065 = vadd.xlane.f32.xlu1 %v1064_v8  ;;  %v1061_v10 = vsel %vm946_vm6, %v3023_v18, 0.0 }
 0x384   :  { %v1005_v22 = vsub.f32 %v2953_v16, %v979_v21  ;;  %1062 = vadd.xlane.f32.xlu0 %v1061_v10 }
 0x385   :  { %v1033_v23 = vmul.f32 1.442695, %v1006_v20 }
 0x386   :  { %v1031_v24 = vmul.f32 1.442695, %v1005_v22 }
 0x387   :  { %2597 = vpow2.f32 %v1033_v23 }
 0x388   :  { %2599 = vpow2.f32 %v1031_v24 }
 0x389   :  { %v3031_v25 = vpop.eup %2593 }
 0x38a   :  { %v3033_v27 = vpop.eup %2595  ;;  %v988_v31 = vpop.xlane.xlu1 %987  ;;  %v1070_v14 = vsel %vm946_vm6, %v3031_v25, 0.0 }
 0x38b   :  { %v1008_v35 = vsub.f32 %v2961_v26, %v988_v31  ;;  %v985_v37 = vpop.xlane.xlu0 %984  ;;  %1071 = vadd.xlane.f32.xlu1 %v1070_v14  ;;  %v1067_v16 = vsel %vm946_vm6, %v3033_v27, 0.0 }
 0x38c   :  { %v1007_v38 = vsub.f32 %v2965_v29, %v985_v37  ;;  %1068 = vadd.xlane.f32.xlu0 %v1067_v16 }
 0x38d   :  { %v1037_v42 = vmul.f32 1.442695, %v1008_v35 }
 0x38e   :  { %v1035_v44 = vmul.f32 1.442695, %v1007_v38 }
 0x38f   :  { %2601 = vpow2.f32 %v1037_v42 }
 0x390   :  { %2603 = vpow2.f32 %v1035_v44 }
 0x391   :  { %v3041_v47 = vpop.eup %2597 }
 0x392   :  { %v3043_v48 = vpop.eup %2599  ;;  %v1076_v45 = vsel %vm946_vm6, %v3041_v47, 0.0 }
 0x393   :  { %1077 = vadd.xlane.f32.xlu1 %v1076_v45  ;;  %v1073_v26 = vsel %vm946_vm6, %v3043_v48, 0.0 }
 0x394   :  { %1074 = vadd.xlane.f32.xlu0 %v1073_v26 }
 0x399   :  { %v1048_v39 = vpop.xlane.xlu1 %1047  ;;  %v3049_v49 = vpop.eup %2601 }
 0x39a   :  { %2605 = vrcp.f32 %v1048_v39  ;;  %v1045_v29 = vpop.xlane.xlu0 %1044  ;;  %v3051_v51 = vpop.eup %2603  ;;  %v1082_v56 = vsel %vm946_vm6, %v3049_v49, 0.0 }
 0x39b   :  { %2607 = vrcp.f32 %v1045_v29  ;;  %1083 = vadd.xlane.f32.xlu1 %v1082_v56  ;;  %v1079_v57 = vsel %vm946_vm6, %v3051_v51, 0.0 }
 0x39c   :  { %1080 = vadd.xlane.f32.xlu0 %v1079_v57 }
 0x39d   :  { %v994_v50 = vpop.xlane.xlu1 %993 }
 0x39e   :  { %v1010_v52 = vsub.f32 %v2979_v43, %v994_v50  ;;  %v991_v54 = vpop.xlane.xlu0 %990 }
 0x39f   :  { %v1009_v30 = vsub.f32 %v2985_v46, %v991_v54 }
 0x3a0   :  { %v1041_v28 = vmul.f32 1.442695, %v1010_v52 }
 0x3a1   :  { %v1039_v58 = vmul.f32 1.442695, %v1009_v30  ;;  %v2559_v60 = vpop.permute.xlu1 %2558 }
 0x3a2   :  { %2609 = vpow2.f32 %v1041_v28  ;;  %v2554_v55 = vpop.permute.xlu0 %2553  ;;  %v2561_v61 = vunpack.i.h.bf16 %v2559_v60  ;;  %v2560_v0 = vunpack.i.l.bf16 %v2559_v60 }
 0x3a3   :  { %2611 = vpow2.f32 %v1039_v58  ;;  %v2556_v62 = vunpack.i.h.bf16 %v2554_v55  ;;  %v2555_v63 = vunpack.i.l.bf16 %v2554_v55 }
 0x3a4   :  { %v2606_v43 = vpop.eup %2605  ;;  %v2415_v1 = vpack.c.bf16 %v2561_v61, %v2560_v0 }
 0x3a5   :  { %v2608_v59 = vpop.eup %2607  ;;  %v2411_v2 = vpack.c.bf16 %v2556_v62, %v2555_v63  ;;  %v1094_v7 = vmul.f32 %v2606_v43, %v2971_v40 }
 0x3a6   :  { %v1092_v46 = vmul.f32 %v2608_v59, %v2973_v41 }
 0x3a7   :  { %2412 = vmatprep.subr.bf16.mxu1 %v2411_v2 }
 0x3a8   :  { %2252 = vmatprep.mubr.msk.f32.mxu0 %vm946_vm6, %v1092_v46 }
 0x3a9   :  { %2253 = vmatmul.mubr.msk.f32.vlgmr.msra.gmra.mrb[2].mxu0 %vm946_vm6, %v1094_v7 }
 0x3aa   :  { %2410 = vmatpush3.bf16.msra.mxu0 %v2877_v34  ;;  %v2564_v34 = vpop.permute.xlu0 %2563 }
 0x3ab   :  { %2416 = vmatprep.subr.bf16.mxu0 %v2415_v1  ;;  %v2566_v20 = vunpack.i.h.bf16 %v2564_v34  ;;  %v2565_v21 = vunpack.i.l.bf16 %v2564_v34  ;;  %v1895_v34 = vld [vmem:[%s3155_s2 + $0x8] sm:$0xff] }
 0x3ac   :  { %v3064_v9 = vpop.eup %2609 }
 0x3ad   :  { %v3066_v11 = vpop.eup %2611  ;;  %v1088_v3 = vsel %vm946_vm6, %v3064_v9, 0.0 }
 0x3ae   :  { %1089 = vadd.xlane.f32.xlu1 %v1088_v3  ;;  %v1085_v40 = vsel %vm946_vm6, %v3066_v11, 0.0 }
 0x3af   :  { %1086 = vadd.xlane.f32.xlu0 %v1085_v40  ;;  %v1894_v40 = vld [vmem:[%s3155_s2] sm:$0xff] }
 0x3bf   :  { %2568 = vrot.lane.b32.xlu1 %v2799_v32, %s2674_s25 }
 0x3c5   :  { %2573 = vrot.lane.b32.xlu0 %v2804_v36, %s2674_s25  ;;  %v2419_v36 = vpack.c.bf16 %v2566_v20, %v2565_v21 }
 0x400   :  { %v1054_v41 = vpop.xlane.xlu1 %1053 }
 0x401   :  { %2613 = vrcp.f32 %v1054_v41  ;;  %v1051_v12 = vpop.xlane.xlu0 %1050  ;;  %v1896_v41 = vld [vmem:[%s3155_s2 + $0x10] sm:$0xff] }
 0x402   :  { %2615 = vrcp.f32 %v1051_v12  ;;  %v2431_v12 = vpack.c.bf16 %v1895_v34, %v1894_v40 }
 0x408   :  { %v1060_v13 = vpop.xlane.xlu1 %1059 }
 0x409   :  { %2617 = vrcp.f32 %v1060_v13  ;;  %v1057_v15 = vpop.xlane.xlu0 %1056  ;;  %v1897_v13 = vld [vmem:[%s3155_s2 + $0x18] sm:$0xff]  ;;  %s2680_s2 = smov 24  }
 0x40a   :  { %2619 = vrcp.f32 %v1057_v15  ;;  %v2437_v15 = vpack.c.bf16 %v1897_v13, %v1896_v41 }
 0x40b   :  { %v2614_v19 = vpop.eup %2613 }
 0x40c   :  { %v2616_v8 = vpop.eup %2615  ;;  %v1098_v32 = vmul.f32 %v2614_v19, %v3001_v33 }
 0x40d   :  { %v1096_v10 = vmul.f32 %v2616_v8, %v3003_v53 }
 0x40f   :  { %2259 = vmatprep.mubr.msk.f32.mxu1 %vm946_vm6, %v1096_v10 }
 0x410   :  { %v1066_v22 = vpop.xlane.xlu1 %1065  ;;  %2260 = vmatmul.mubr.msk.f32.vlgmr.msra.gmra.mrb[16].mxu1 %vm946_vm6, %v1098_v32 }
 0x411   :  { %2621 = vrcp.f32 %v1066_v22  ;;  %2414 = vmatpush3.bf16.msra.mxu1 %v2411_v2  ;;  %v1063_v23 = vpop.xlane.xlu0 %1062 }
 0x412   :  { %2623 = vrcp.f32 %v1063_v23  ;;  %2420 = vmatprep.subr.bf16.mxu1 %v2419_v36  ;;  %v2641_v23 = vld [vmem:[%s3156_s3] ss:$0 sm:$0xff]  ;;  %s2683_s3 = smov [#allocation2]  }
 0x413   :  { %v2618_v24 = vpop.eup %2617  ;;  %s2001_s17 = sshll.u32 %s2683_s3, 4  ;;  %s2002_s17 = int_to_ptr.vmem [resolvable:$true] %s2001_s17 }
 0x414   :  { %v2620_v31 = vpop.eup %2619  ;;  %v1102_v35 = vmul.f32 %v2618_v24, %v3011_v5  ;;  %s2642_s18 = scalar_lea.vmem %s2002_s17, 256  ;;  %p2647_p1 = scmp.lt.s32.totalorder %s2002_s17, %s2002_s17 }
 0x415   :  { %v1100_v14 = vmul.f32 %v2620_v31, %v3013_v6  ;;  %p2643_p0 = scmp.ne.s32.totalorder %s2002_s17, %s2642_s18  ;;  %p2648_p2 = scmp.lt.s32.totalorder %s2642_s18, %s2642_s18 }
 0x417   :  { %2266 = vmatprep.mubr.msk.f32.mxu0 %vm946_vm6, %v1100_v14  ;;  %p2649_p3 = por %p2648_p2, %p2647_p1 }
 0x418   :  { %v1072_v33 = vpop.xlane.xlu1 %1071  ;;  %2267 = vmatmul.mubr.msk.f32.vlgmr.msra.gmra.mrb[4].mxu0 %vm946_vm6, %v1102_v35 }
 0x419   :  { %2625 = vrcp.f32 %v1072_v33  ;;  %2418 = vmatpush3.bf16.msra.mxu0 %v2415_v1  ;;  %v1069_v53 = vpop.xlane.xlu0 %1068  ;;  %p2650_p4 = pnand %p2649_p3, %p2643_p0 }
 0x41a   :  { %2627 = vrcp.f32 %v1069_v53 }
 0x41b   :  { %v2622_v37 = vpop.eup %2621 }
 0x41c   :  { %v2624_v16 = vpop.eup %2623  ;;  %v1106_v42 = vmul.f32 %v2622_v37, %v3021_v17 }
 0x41d   :  { %v1104_v38 = vmul.f32 %v2624_v16, %v3023_v18 }
 0x41f   :  { %2273 = vmatprep.mubr.msk.f32.mxu1 %vm946_vm6, %v1104_v38 }
 0x420   :  { %v1078_v6 = vpop.xlane.xlu1 %1077  ;;  %2274 = vmatmul.mubr.msk.f32.vlgmr.msra.gmra.mrb[18].mxu1 %vm946_vm6, %v1106_v42 }
 0x421   :  { %2629 = vrcp.f32 %v1078_v6  ;;  %2422 = vmatpush3.bf16.msra.mxu1 %v2419_v36  ;;  %v1075_v5 = vpop.xlane.xlu0 %1074 }
 0x422   :  { %2631 = vrcp.f32 %v1075_v5 }
 0x423   :  { %v2626_v44 = vpop.eup %2625 }
 0x424   :  { %v2628_v45 = vpop.eup %2627  ;;  %v1110_v39 = vmul.f32 %v2626_v44, %v3031_v25 }
 0x425   :  { %v1108_v26 = vmul.f32 %v2628_v45, %v3033_v27 }
 0x427   :  { %2280 = vmatprep.mubr.msk.f32.mxu0 %vm946_vm6, %v1108_v26 }
 0x428   :  { %2281 = vmatmul.mubr.msk.f32.vlgmr.msra.gmra.mrb[6].mxu0 %vm946_vm6, %v1110_v39  ;;  %v1084_v54 = vpop.xlane.xlu1 %1083 }
 0x429   :  { %v1081_v17 = vpop.xlane.xlu0 %1080 }
 0x42a   :  { %2633 = vrcp.f32 %v1081_v17 }
 0x42b   :  { %v2630_v18 = vpop.eup %2629  ;;  %2635 = vrcp.f32 %v1084_v54 }
 0x42c   :  { %v2632_v29 = vpop.eup %2631  ;;  %v1114_v52 = vmul.f32 %v2630_v18, %v3041_v47 }
 0x42d   :  { %v1112_v50 = vmul.f32 %v2632_v29, %v3043_v48 }
 0x42f   :  { %2287 = vmatprep.mubr.msk.f32.mxu1 %vm946_vm6, %v1112_v50 }
 0x430   :  { %2288 = vmatmul.mubr.msk.f32.vlgmr.msra.gmra.mrb[20].mxu1 %vm946_vm6, %v1114_v52 }
 0x434   :  { %v2634_v27 = vpop.eup %2633 }
 0x435   :  { %v1116_v25 = vmul.f32 %v2634_v27, %v3051_v51  ;;  %v2636_v62 = vpop.eup %2635 }
 0x436   :  { %v1118_v51 = vmul.f32 %v2636_v62, %v3049_v49 }
 0x437   :  { %2294 = vmatprep.mubr.msk.f32.mxu0 %vm946_vm6, %v1116_v25 }
 0x43b   :  { %v1090_v56 = vpop.xlane.xlu1 %1089 }
 0x43c   :  { %2637 = vrcp.f32 %v1090_v56  ;;  %v1087_v30 = vpop.xlane.xlu0 %1086 }
 0x43d   :  { %2639 = vrcp.f32 %v1087_v30 }
 0x43f   :  { %v2569_v57 = vpop.permute.xlu1 %2568 }
 0x440   :  { %v2571_v28 = vunpack.i.h.bf16 %v2569_v57  ;;  %v2570_v48 = vunpack.i.l.bf16 %v2569_v57  ;;  %v2574_v58 = vpop.permute.xlu0 %2573 }
 0x441   :  { %v2576_v47 = vunpack.i.h.bf16 %v2574_v58  ;;  %v2575_v60 = vunpack.i.l.bf16 %v2574_v58 }
 0x442   :  { %v2423_v55 = vpack.c.bf16 %v2571_v28, %v2570_v48 }
 0x443   :  { %v2427_v63 = vpack.c.bf16 %v2576_v47, %v2575_v60 }
 0x444   :  { %2424 = vmatprep.subr.bf16.mxu0 %v2423_v55 }
 0x445   :  { %2426 = vmatpush3.bf16.msra.mxu0 %v2423_v55  ;;  %2428 = vmatprep.subr.bf16.mxu1 %v2427_v63 }
 0x446   :  { %v2638_v43 = vpop.eup %2637  ;;  %2430 = vmatpush3.bf16.msra.mxu1 %v2427_v63  ;;  %2433 = vmatprep.subr.msk.bf16.mxu0 %vm2721_vm1, %v2431_v12 }
 0x447   :  { %v2640_v59 = vpop.eup %2639  ;;  %v1122_v0 = vmul.f32 %v2638_v43, %v3064_v9 }
 0x448   :  { %2295 = vmatmul.mubr.msk.f32.vlgmr.msra.gmra.mrb[8].mxu0 %vm946_vm6, %v1118_v51  ;;  %v1120_v61 = vmul.f32 %v2640_v59, %v3066_v11 }
 0x44a   :  { %2301 = vmatprep.mubr.msk.f32.mxu1 %vm946_vm6, %v1120_v61 }
 0x44b   :  { %2302 = vmatmul.mubr.msk.f32.vlgmr.msra.gmra.mrb[22].mxu1 %vm946_vm6, %v1122_v0 }
 0x44e   :  { %2436 = vmatpush3.bf16.xpose.msk.msra.mxu0 %vm2721_vm1, %v2431_v12 }
 0x44f   :  { %2439 = vmatprep.subr.msk.bf16.mxu0 %vm2721_vm1, %v2437_v15 }
 0x456   :  { %2442 = vmatpush3.bf16.xpose.msk.msra.mxu0 %vm2721_vm1, %v2437_v15 }
 0x47c   :  { %v3104_v2 = vpop.f32.mrb[2].mxu0 }
 0x47d   :  { %v1201_v46 = vpop.f32.mrb[3].mxu0 }
 0x4e3   :  { %v2261_v7 = vpop.f32.mrb[16].mxu1 }
 0x4e4   :  { %1823 = vrot.lane.b32.xlu0 %v2261_v7, %s2675_s26  ;;  %v1288_v1 = vpop.f32.mrb[17].mxu1 }
 0x4e5   :  { %1821 = vrot.lane.b32.xlu1 %v1288_v1, %s2675_s26 }
 0x4eb   :  { %v2268_v49 = vpop.f32.mrb[4].mxu0 }
 0x4ec   :  { %1831 = vrot.lane.b32.xlu0 %v2268_v49, %s2676_s27  ;;  %v1375_v3 = vpop.f32.mrb[5].mxu0 }
 0x4ed   :  { %1829 = vrot.lane.b32.xlu1 %v1375_v3, %s2676_s27 }
 0x4f3   :  { %v2275_v9 = vpop.f32.mrb[18].mxu1 }
 0x4f4   :  { %1839 = vrot.lane.b32.xlu0 %v2275_v9, %s2677_s28  ;;  %v1462_v11 = vpop.f32.mrb[19].mxu1 }
 0x4f5   :  { %1837 = vrot.lane.b32.xlu1 %v1462_v11, %s2677_s28 }
 0x4fb   :  { %v2282_v19 = vpop.f32.mrb[6].mxu0 }
 0x4fc   :  { %v1549_v8 = vpop.f32.mrb[7].mxu0  ;;  %1847 = vrot.lane.b32.xlu0 %v2282_v19, %s2678_s11 }
 0x4fd   :  { %1845 = vrot.lane.b32.xlu1 %v1549_v8, %s2678_s11 }
 0x503   :  { %v2289_v20 = vpop.f32.mrb[20].mxu1 }
 0x504   :  { %1855 = vrot.lane.b32.xlu0 %v2289_v20, %s2679_s12  ;;  %v1636_v21 = vpop.f32.mrb[21].mxu1 }
 0x505   :  { %1853 = vrot.lane.b32.xlu1 %v1636_v21, %s2679_s12 }
 0x51b   :  { %v2296_v10 = vpop.f32.mrb[8].mxu0 }
 0x51c   :  { %v1723_v32 = vpop.f32.mrb[9].mxu0  ;;  %1863 = vrot.lane.b32.xlu0 %v2296_v10, %s2680_s2 }
 0x51d   :  { %1861 = vrot.lane.b32.xlu1 %v1723_v32, %s2680_s2 }
 0x51e   :  { %v2303_v36 = vpop.f32.mrb[22].mxu1 }
 0x51f   :  { %v1810_v22 = vpop.f32.mrb[23].mxu1 }
 0x520   :  { %1871 = vrot.lane.b32.xlu0 %v2303_v36, %s2681_s13 }
 0x521   :  { %1869 = vrot.lane.b32.xlu1 %v1810_v22, %s2681_s13 }
 0x525   :  { %1898 = vrot.lane.b32.xlu1 %v2641_v23, %s2682_s16 }
 0x556   :  { %v1824_v24 = vpop.permute.xlu0 %1823 }
 0x557   :  { %v1822_v4 = vpop.permute.xlu1 %1821  ;;  %v1876_v5 = vsel %vm223_vm2, %v3104_v2, %v1824_v24 }
 0x558   :  { %v1875_v42 = vsel %vm223_vm2, %v1201_v46, %v1822_v4 }
 0x55e   :  { %v1832_v31 = vpop.permute.xlu0 %1831 }
 0x55f   :  { %v1830_v14 = vpop.permute.xlu1 %1829  ;;  %v1879_v26 = vsel %vm1877_vm7, %v1876_v5, %v1832_v31 }
 0x560   :  { %v1878_v44 = vsel %vm1877_vm7, %v1875_v42, %v1830_v14 }
 0x566   :  { %v1840_v35 = vpop.permute.xlu0 %1839 }
 0x567   :  { %v1838_v33 = vpop.permute.xlu1 %1837  ;;  %v1882_v17 = vsel %vm1880_vm8, %v1879_v26, %v1840_v35 }
 0x568   :  { %v1881_v39 = vsel %vm1880_vm8, %v1878_v44, %v1838_v33 }
 0x56e   :  { %v1848_v53 = vpop.permute.xlu0 %1847 }
 0x56f   :  { %v1846_v37 = vpop.permute.xlu1 %1845  ;;  %v1884_v29 = vsel %vm946_vm6, %v1882_v17, %v1848_v53 }
 0x570   :  { %v1883_v18 = vsel %vm946_vm6, %v1881_v39, %v1846_v37 }
 0x576   :  { %v1856_v16 = vpop.permute.xlu0 %1855 }
 0x577   :  { %v1854_v38 = vpop.permute.xlu1 %1853  ;;  %v1887_v54 = vsel %vm1885_vm9, %v1884_v29, %v1856_v16 }
 0x578   :  { %v1886_v50 = vsel %vm1885_vm9, %v1883_v18, %v1854_v38 }
 0x58e   :  { %v1864_v6 = vpop.permute.xlu0 %1863 }
 0x58f   :  { %v1862_v45 = vpop.permute.xlu1 %1861  ;;  %v1890_v56 = vsel %vm1888_vm10, %v1887_v54, %v1864_v6 }
 0x590   :  { %v1889_v27 = vsel %vm1888_vm10, %v1886_v50, %v1862_v45 }
 0x592   :  { %v1872_v52 = vpop.permute.xlu0 %1871 }
 0x593   :  { %v1870_v25 = vpop.permute.xlu1 %1869  ;;  %v1893_v57 = vsel %vm1891_vm11, %v1890_v56, %v1872_v52 }
 0x594   :  { %v1892_v30 = vsel %vm1891_vm11, %v1889_v27, %v1870_v25 }
 0x595   :  { %2312 = vmatprep.mubr.msk.f32.mxu0 %vm39_vm0, %v1892_v30 }
 0x596   :  { %2313 = vmatmul.mubr.msk.f32.vlgmr.msra.gmra.mrb[10].mxu0 %vm39_vm0, %v1893_v57 }
 0x597   :  { %v1899_v28 = vpop.permute.xlu1 %1898 }
 0x669   :  { %v2314_v48 = vpop.f32.mrb[10].mxu0 }
 0x66a   :  { %v1991_v58 = vadd.f32 %v2314_v48, %v1899_v28  ;;  %v1985_v47 = vpop.f32.mrb[11].mxu0 }
 0x66b   :  { %v1986_v60 = vadd.f32 %v1985_v47, %v1899_v28 }
 0x66c   :  { %1995 = vst.msk [vmem:[#allocation2 + $0x8] sm:$0xff] %vm39_vm0, %v1991_v58 }
 0x66d   :  { %1994 = vst.msk [vmem:[#allocation2] sm:$0xff] %vm39_vm0, %v1986_v60 }
 0x66e   :  { %2653 = shalt.err (!%p2650_p4)
}
 0x66f   :  { %s2654_s0 = scalar_lea.hbm %s3157_s4, 256 }
 0x670   :  { %p2655_p5 = scmp.ne.s32.totalorder %s3157_s4, %s2654_s0  ;;  %p2658_p6 = scmp.lt.u32.totalorder %s2654_s0, %s3157_s4 }
 0x672   :  { %p2660_p7 = pnand %p2658_p6, %p2655_p5 }
 0x674   :  { %2663 = shalt.err (!%p2660_p7)
}
 0x675   :  { %s2684_s24 = smov 128  }
 0x676   :  { %2007 = dma.vmem_to_hbm [thread:$0]  %s2002_s17, 256, %s3157_s4, [#allocation3], %s2684_s24, %s2684_s24, %s2676_s27  }
 0x677   :  { %2664 = dma.done.wait [#allocation3], 256  }
 0x678   :  { %2665 = vsyncadd [#allocation3], 4294967040 }
 0x679   :  { %2011 = vsyncpa [#allocation3], 1 }

</bundles_post_ra>
